<compile_context>
chip_gen: v5e
topology: v5e:2x2
jax: 0.10.0
libtpu: 0.0.40
codegen_flags: <defaults>
</compile_context>

<pallas_src>
import functools

import jax
import jax.numpy as jnp
from jax import lax
from jax.experimental import pallas as pl
from jax.experimental.pallas import tpu as pltpu


def _sandpart2_kernel(x_ref, wblk_ref, bpw_ref, tap_ref, bdw_ref, o_ref, *, h, cout):
    # Single-step shapes (whole problem, batch folded into sublanes):
    #   x_ref   : (N*H, W*Cin)
    #   wblk_ref: (W*Cin, W*Cout)     block-diagonal pointwise weight
    #   bpw_ref : (N*H, W*Cout)       pre-broadcast pointwise bias
    #   tap_ref : (9, N*H, W*Cout)    depthwise taps, pre-broadcast over sublanes,
    #                                 W-edge (pad) zeros baked in
    #   bdw_ref : (N*H, W*Cout)       pre-broadcast depthwise bias
    #   o_ref   : (N*H, W*Cout)       last dim is a multiple of 128 -> unmasked stores
    NH = o_ref.shape[0]
    WCo = o_ref.shape[1]

    x = x_ref[...]                                                   # (N*H, W*Cin)

    # ---- pointwise 1x1 conv: one lane-dense MXU matmul + bias + ReLU ----
    y = jnp.dot(x, wblk_ref[...], preferred_element_type=jnp.float32)  # (N*H, W*Cout)
    y = jnp.maximum(y + bpw_ref[...], 0.0)

    # ---- depthwise 3x3 conv, stride=1, pad=1 ----
    # Horizontal (W) neighbours via lane rotations (XLU); wrapped lanes are killed by the
    # zero edge masks baked into the tap table.
    y_l = pltpu.roll(y, shift=cout, axis=1)          # reads column w-1
    y_r = pltpu.roll(y, shift=WCo - cout, axis=1)    # reads column w+1 (shift = -cout mod WCo)

    def hsum(k):
        # sum of the 3 horizontal taps for kernel row k, evaluated at every input row;
        # tap rows are pre-broadcast -> plain vreg*vreg multiplies.
        return (y_l * tap_ref[3 * k + 0]
                + y * tap_ref[3 * k + 1]
                + y_r * tap_ref[3 * k + 2])

    s_top = hsum(0)      # needs input row h-1
    s_mid = hsum(1)      # input row h
    s_bot = hsum(2)      # needs input row h+1

    # Vertical (H) neighbours via sublane rotations over the folded (N*H) axis.
    # row % h masks implement the pad=1 zeros AND kill cross-image leakage from the roll.
    row = lax.broadcasted_iota(jnp.int32, (NH, 1), 0)
    rh = row % h
    s_top = jnp.where(rh == 0, 0.0, pltpu.roll(s_top, shift=1, axis=0))
    s_bot = jnp.where(rh == h - 1, 0.0, pltpu.roll(s_bot, shift=NH - 1, axis=0))

    o_ref[...] = (s_top + s_mid + s_bot + bdw_ref[...]).astype(o_ref.dtype)


def sandpart2_prepare(w_pw, b_pw, w_dw, b_dw, n, h, w):
    """One-time (module-init) parameter packing for the fused lane-dense layout."""
    cin, cout = w_pw.shape
    nh, wco = n * h, w * cout
    f32 = jnp.float32

    # Block-diagonal pointwise weight: one matmul emits the lane-dense (N*H, W*Cout) result.
    #   w_blk[w*Cin + ci, w*Cout + co] = w_pw[ci, co]
    w_blk = jnp.kron(jnp.eye(w, dtype=f32), w_pw.astype(f32))          # (W*Cin, W*Cout)

    # Biases, pre-broadcast over sublanes (plain vreg adds in the kernel).
    b_pw_f = jnp.broadcast_to(jnp.tile(b_pw.astype(f32), w)[None, :], (nh, wco))
    b_dw_f = jnp.broadcast_to(jnp.tile(b_dw.astype(f32), w)[None, :], (nh, wco))

    # Depthwise taps broadcast over W with W-edge (zero padding) masks baked in, then
    # pre-broadcast over sublanes:
    #   taps[3*ki + kj, :, w*Cout + co] = w_dw[ki, kj, co] * (0 if column w+kj-1 OOB)
    wcol = jnp.arange(w)
    valid = jnp.stack([wcol >= 1, jnp.ones((w,), bool), wcol <= w - 2], axis=0)   # (3, W)
    taps = (w_dw.astype(f32)[:, :, None, :] * valid[None, :, :, None].astype(f32))
    taps = taps.reshape(9, wco)
    taps_b = jnp.broadcast_to(taps[:, None, :], (9, nh, wco))           # (9, N*H, W*Cout)

    return w_blk, b_pw_f, taps_b, b_dw_f


@functools.partial(jax.jit, static_argnames=("n", "h", "w", "cout"))
def _sandpart2_apply(x, w_blk, b_pw_f, taps_b, b_dw_f, *, n, h, w, cout):
    nh = n * h
    wci = w_blk.shape[0]
    wco = w * cout
    f32 = jnp.float32

    x_f = x.reshape(nh, wci)     # batch folded into sublanes; contiguous view

    kernel = functools.partial(_sandpart2_kernel, h=h, cout=cout)

    grid_spec = pltpu.PrefetchScalarGridSpec(
        num_scalar_prefetch=0,
        grid=(1,),                       # single step: whole problem fits comfortably in VMEM
        in_specs=[
            pl.BlockSpec((nh, wci), lambda i: (0, 0)),
            pl.BlockSpec((wci, wco), lambda i: (0, 0)),
            pl.BlockSpec((nh, wco), lambda i: (0, 0)),
            pl.BlockSpec((9, nh, wco), lambda i: (0, 0, 0)),
            pl.BlockSpec((nh, wco), lambda i: (0, 0)),
        ],
        out_specs=pl.BlockSpec((nh, wco), lambda i: (0, 0)),
    )

    out = pl.pallas_call(
        kernel,
        out_shape=jax.ShapeDtypeStruct((nh, wco), f32),
        grid_spec=grid_spec,
        compiler_params=pltpu.CompilerParams(
            dimension_semantics=("arbitrary",)),
    )(x_f, w_blk, b_pw_f, taps_b, b_dw_f)

    return out.reshape(n, h, w, cout)


def sandpart2_pallas(x, w_pw, b_pw, w_dw, b_dw):
    """Convenience end-to-end call. x: (N, H, W, Cin) f32 -> (N, H, W, Cout) f32.
    In real use, call sandpart2_prepare once at init and _sandpart2_apply per forward."""
    n, h, w, _ = x.shape
    cout = w_pw.shape[1]
    params = sandpart2_prepare(w_pw, b_pw, w_dw, b_dw, n, h, w)
    return _sandpart2_apply(x, *params, n=n, h=h, w=w, cout=cout)


def sandpart2_ref(x, w_pw, b_pw, w_dw, b_dw):
    """Pure-JAX reference (NHWC)."""
    y = jnp.einsum("nhwc,co->nhwo", x, w_pw) + b_pw
    y = jnp.maximum(y, 0.0)
    cout = w_pw.shape[1]
    w_hwio = w_dw.reshape(3, 3, 1, cout)  # HWIO with I=1, feature_group_count=Cout
    out = lax.conv_general_dilated(
        y, w_hwio, window_strides=(1, 1), padding=((1, 1), (1, 1)),
        dimension_numbers=("NHWC", "HWIO", "NHWC"),
        feature_group_count=cout)
    return out + b_dw


if __name__ == "__main__":
    # Small shapes consistent with the module: batch=2, in_channels=4, out_channels=8, 16x16.
    N, H, W, Cin, Cout = 2, 16, 16, 4, 8

    key = jax.random.PRNGKey(0)
    k_x, k_wpw, k_bpw, k_wdw, k_bdw = jax.random.split(key, 5)

    x = jax.random.normal(k_x, (N, H, W, Cin), dtype=jnp.float32)
    # Equivalent conv parameters (deterministic synthetic init standing in for OREPA reparam).
    w_pw = 0.1 * jax.random.normal(k_wpw, (Cin, Cout), dtype=jnp.float32)
    b_pw = 0.1 * jax.random.normal(k_bpw, (Cout,), dtype=jnp.float32)
    w_dw = 0.1 * jax.random.normal(k_wdw, (3, 3, Cout), dtype=jnp.float32)
    b_dw = 0.1 * jax.random.normal(k_bdw, (Cout,), dtype=jnp.float32)

    # Hoisted one-time parameter packing (would live at module init in real use).
    params = sandpart2_prepare(w_pw, b_pw, w_dw, b_dw, N, H, W)
    params = jax.block_until_ready(params)

    out = _sandpart2_apply(x, *params, n=N, h=H, w=W, cout=Cout)
    out = jax.block_until_ready(out)

    ref = sandpart2_ref(x, w_pw, b_pw, w_dw, b_dw)
    assert out.shape == (N, H, W, Cout)
    assert jnp.allclose(out, ref, atol=1e-4, rtol=1e-4), \
        f"max abs err {jnp.max(jnp.abs(out - ref))}"

    # Convenience path sanity check too.
    out2 = jax.block_until_ready(sandpart2_pallas(x, w_pw, b_pw, w_dw, b_dw))
    assert jnp.allclose(out2, ref, atol=1e-4, rtol=1e-4)

    print("KERNEL_OK")
</pallas_src>

<mosaic_0001>
module attributes {stable_mosaic.version = 11 : i64} {
  func.func @_sandpart2_kernel(%arg0: i32, %arg1: memref<32x64xf32, #tpu.memory_space<vmem>>, %arg2: memref<64x128xf32, #tpu.memory_space<vmem>>, %arg3: memref<32x128xf32, #tpu.memory_space<vmem>>, %arg4: memref<9x32x128xf32, #tpu.memory_space<vmem>>, %arg5: memref<32x128xf32, #tpu.memory_space<vmem>>, %arg6: memref<32x128xf32, #tpu.memory_space<vmem>>) attributes {dimension_semantics = [#tpu.dimension_semantics<arbitrary>], iteration_bounds = array<i64: 1>, scalar_prefetch = 0 : i64, scratch_operands = 0 : i64, tpu.core_type = #tpu.core_type<tc>, window_params = [{pipeline_mode = #tpu.pipeline_mode<synchronous>, transform_indices = @transform_0, window_bounds = array<i64: 32, 64>}, {pipeline_mode = #tpu.pipeline_mode<synchronous>, transform_indices = @transform_1, window_bounds = array<i64: 64, 128>}, {pipeline_mode = #tpu.pipeline_mode<synchronous>, transform_indices = @transform_2, window_bounds = array<i64: 32, 128>}, {pipeline_mode = #tpu.pipeline_mode<synchronous>, transform_indices = @transform_3, window_bounds = array<i64: 9, 32, 128>}, {pipeline_mode = #tpu.pipeline_mode<synchronous>, transform_indices = @transform_4, window_bounds = array<i64: 32, 128>}, {pipeline_mode = #tpu.pipeline_mode<synchronous>, transform_indices = @transform_5, window_bounds = array<i64: 32, 128>}]} {
    %c0 = arith.constant 0 : index
    %c0_0 = arith.constant 0 : index
    %0 = vector.load %arg1[%c0, %c0_0] : memref<32x64xf32, #tpu.memory_space<vmem>>, vector<32x64xf32>
    %c0_1 = arith.constant 0 : index
    %c0_2 = arith.constant 0 : index
    %1 = vector.load %arg2[%c0_1, %c0_2] : memref<64x128xf32, #tpu.memory_space<vmem>>, vector<64x128xf32>
    %cst = arith.constant dense<0.000000e+00> : vector<32x128xf32>
    %2 = tpu.matmul %0, %1, %cst {dimension_numbers = #tpu.dot_dimension_numbers<[1], [0], [0], [1], [0, 0, 1, 1], [], []>} : vector<32x64xf32>, vector<64x128xf32>, vector<32x128xf32> -> vector<32x128xf32>
    %c0_3 = arith.constant 0 : index
    %c0_4 = arith.constant 0 : index
    %3 = vector.load %arg3[%c0_3, %c0_4] : memref<32x128xf32, #tpu.memory_space<vmem>>, vector<32x128xf32>
    %4 = arith.addf %2, %3 : vector<32x128xf32>
    %cst_5 = arith.constant 0.000000e+00 : f32
    %5 = vector.broadcast %cst_5 : f32 to vector<32x128xf32>
    %6 = arith.maximumf %4, %5 : vector<32x128xf32>
    %c8_i32 = arith.constant 8 : i32
    %7 = tpu.dynamic_rotate %6 by %c8_i32 dim 1 : vector<32x128xf32>, i32 -> vector<32x128xf32>
    %c120_i32 = arith.constant 120 : i32
    %8 = tpu.dynamic_rotate %6 by %c120_i32 dim 1 : vector<32x128xf32>, i32 -> vector<32x128xf32>
    %c0_6 = arith.constant 0 : index
    %c0_7 = arith.constant 0 : index
    %c0_8 = arith.constant 0 : index
    %9 = vector.load %arg4[%c0_6, %c0_7, %c0_8] : memref<9x32x128xf32, #tpu.memory_space<vmem>>, vector<1x32x128xf32>
    %10 = vector.shape_cast %9 : vector<1x32x128xf32> to vector<32x128xf32>
    %11 = arith.mulf %7, %10 : vector<32x128xf32>
    %c1 = arith.constant 1 : index
    %c0_9 = arith.constant 0 : index
    %c0_10 = arith.constant 0 : index
    %12 = vector.load %arg4[%c1, %c0_9, %c0_10] : memref<9x32x128xf32, #tpu.memory_space<vmem>>, vector<1x32x128xf32>
    %13 = vector.shape_cast %12 : vector<1x32x128xf32> to vector<32x128xf32>
    %14 = arith.mulf %6, %13 : vector<32x128xf32>
    %15 = arith.addf %11, %14 : vector<32x128xf32>
    %c2 = arith.constant 2 : index
    %c0_11 = arith.constant 0 : index
    %c0_12 = arith.constant 0 : index
    %16 = vector.load %arg4[%c2, %c0_11, %c0_12] : memref<9x32x128xf32, #tpu.memory_space<vmem>>, vector<1x32x128xf32>
    %17 = vector.shape_cast %16 : vector<1x32x128xf32> to vector<32x128xf32>
    %18 = arith.mulf %8, %17 : vector<32x128xf32>
    %19 = arith.addf %15, %18 : vector<32x128xf32>
    %c3 = arith.constant 3 : index
    %c0_13 = arith.constant 0 : index
    %c0_14 = arith.constant 0 : index
    %20 = vector.load %arg4[%c3, %c0_13, %c0_14] : memref<9x32x128xf32, #tpu.memory_space<vmem>>, vector<1x32x128xf32>
    %21 = vector.shape_cast %20 : vector<1x32x128xf32> to vector<32x128xf32>
    %22 = arith.mulf %7, %21 : vector<32x128xf32>
    %c4 = arith.constant 4 : index
    %c0_15 = arith.constant 0 : index
    %c0_16 = arith.constant 0 : index
    %23 = vector.load %arg4[%c4, %c0_15, %c0_16] : memref<9x32x128xf32, #tpu.memory_space<vmem>>, vector<1x32x128xf32>
    %24 = vector.shape_cast %23 : vector<1x32x128xf32> to vector<32x128xf32>
    %25 = arith.mulf %6, %24 : vector<32x128xf32>
    %26 = arith.addf %22, %25 : vector<32x128xf32>
    %c5 = arith.constant 5 : index
    %c0_17 = arith.constant 0 : index
    %c0_18 = arith.constant 0 : index
    %27 = vector.load %arg4[%c5, %c0_17, %c0_18] : memref<9x32x128xf32, #tpu.memory_space<vmem>>, vector<1x32x128xf32>
    %28 = vector.shape_cast %27 : vector<1x32x128xf32> to vector<32x128xf32>
    %29 = arith.mulf %8, %28 : vector<32x128xf32>
    %30 = arith.addf %26, %29 : vector<32x128xf32>
    %c6 = arith.constant 6 : index
    %c0_19 = arith.constant 0 : index
    %c0_20 = arith.constant 0 : index
    %31 = vector.load %arg4[%c6, %c0_19, %c0_20] : memref<9x32x128xf32, #tpu.memory_space<vmem>>, vector<1x32x128xf32>
    %32 = vector.shape_cast %31 : vector<1x32x128xf32> to vector<32x128xf32>
    %33 = arith.mulf %7, %32 : vector<32x128xf32>
    %c7 = arith.constant 7 : index
    %c0_21 = arith.constant 0 : index
    %c0_22 = arith.constant 0 : index
    %34 = vector.load %arg4[%c7, %c0_21, %c0_22] : memref<9x32x128xf32, #tpu.memory_space<vmem>>, vector<1x32x128xf32>
    %35 = vector.shape_cast %34 : vector<1x32x128xf32> to vector<32x128xf32>
    %36 = arith.mulf %6, %35 : vector<32x128xf32>
    %37 = arith.addf %33, %36 : vector<32x128xf32>
    %c8 = arith.constant 8 : index
    %c0_23 = arith.constant 0 : index
    %c0_24 = arith.constant 0 : index
    %38 = vector.load %arg4[%c8, %c0_23, %c0_24] : memref<9x32x128xf32, #tpu.memory_space<vmem>>, vector<1x32x128xf32>
    %39 = vector.shape_cast %38 : vector<1x32x128xf32> to vector<32x128xf32>
    %40 = arith.mulf %8, %39 : vector<32x128xf32>
    %41 = arith.addf %37, %40 : vector<32x128xf32>
    %42 = tpu.iota {dimensions = array<i32: 0>} : vector<32x1xi32>
    %c16_i32 = arith.constant 16 : i32
    %c0_i32 = arith.constant 0 : i32
    %43 = arith.cmpi eq, %c16_i32, %c0_i32 : i32
    %c1_i32 = arith.constant 1 : i32
    %44 = arith.select %43, %c1_i32, %c16_i32 : i32
    %45 = vector.broadcast %44 : i32 to vector<32x1xi32>
    %46 = arith.remsi %42, %45 : vector<32x1xi32>
    %c0_i32_25 = arith.constant 0 : i32
    %47 = vector.broadcast %c0_i32_25 : i32 to vector<32x1xi32>
    %48 = arith.cmpi ne, %46, %47 : vector<32x1xi32>
    %c0_i32_26 = arith.constant 0 : i32
    %49 = vector.broadcast %c0_i32_26 : i32 to vector<32x1xi32>
    %50 = arith.cmpi slt, %46, %49 : vector<32x1xi32>
    %c0_i32_27 = arith.constant 0 : i32
    %51 = arith.cmpi slt, %44, %c0_i32_27 : i32
    %52 = vector.broadcast %51 : i1 to vector<32x1xi1>
    %53 = vector.broadcast %52 : vector<32x1xi1> to vector<32x1xi1>
    %54 = arith.xori %50, %53 : vector<32x1xi1>
    %55 = arith.andi %54, %48 : vector<32x1xi1>
    %56 = vector.broadcast %44 : i32 to vector<32x1xi32>
    %57 = arith.addi %46, %56 : vector<32x1xi32>
    %58 = arith.select %55, %57, %46 : vector<32x1xi1>, vector<32x1xi32>
    %c0_i32_28 = arith.constant 0 : i32
    %59 = vector.broadcast %c0_i32_28 : i32 to vector<32x1xi32>
    %60 = arith.cmpi eq, %58, %59 : vector<32x1xi32>
    %c1_i32_29 = arith.constant 1 : i32
    %61 = tpu.dynamic_rotate %19 by %c1_i32_29 dim 0 : vector<32x128xf32>, i32 -> vector<32x128xf32>
    %cst_30 = arith.constant 0.000000e+00 : f32
    %62 = vector.shape_cast %60 : vector<32x1xi1> to vector<32x1xi1>
    %63 = vector.broadcast %62 : vector<32x1xi1> to vector<32x128xi1>
    %64 = vector.broadcast %cst_30 : f32 to vector<32x128xf32>
    %65 = arith.select %63, %64, %61 : vector<32x128xi1>, vector<32x128xf32>
    %c15_i32 = arith.constant 15 : i32
    %66 = vector.broadcast %c15_i32 : i32 to vector<32x1xi32>
    %67 = arith.cmpi eq, %58, %66 : vector<32x1xi32>
    %c31_i32 = arith.constant 31 : i32
    %68 = tpu.dynamic_rotate %41 by %c31_i32 dim 0 : vector<32x128xf32>, i32 -> vector<32x128xf32>
    %cst_31 = arith.constant 0.000000e+00 : f32
    %69 = vector.shape_cast %67 : vector<32x1xi1> to vector<32x1xi1>
    %70 = vector.broadcast %69 : vector<32x1xi1> to vector<32x128xi1>
    %71 = vector.broadcast %cst_31 : f32 to vector<32x128xf32>
    %72 = arith.select %70, %71, %68 : vector<32x128xi1>, vector<32x128xf32>
    %73 = arith.addf %65, %30 : vector<32x128xf32>
    %74 = arith.addf %73, %72 : vector<32x128xf32>
    %c0_32 = arith.constant 0 : index
    %c0_33 = arith.constant 0 : index
    %75 = vector.load %arg5[%c0_32, %c0_33] : memref<32x128xf32, #tpu.memory_space<vmem>>, vector<32x128xf32>
    %76 = arith.addf %74, %75 : vector<32x128xf32>
    %c0_34 = arith.constant 0 : index
    %c0_35 = arith.constant 0 : index
    %77 = vector.load %arg6[%c0_34, %c0_35] : memref<32x128xf32, #tpu.memory_space<vmem>>, vector<32x128xf32>
    tpu.vector_store %arg6[%c0_34, %c0_35], %76 {strides = array<i32>} : memref<32x128xf32, #tpu.memory_space<vmem>>, vector<32x128xf32>,
    return
  }
  func.func @transform_0(%arg0: i32) -> (i32, i32) {
    %c0_i32 = arith.constant 0 : i32
    %c0_i32_0 = arith.constant 0 : i32
    %c0_i32_1 = arith.constant 0 : i32
    return %c0_i32, %c0_i32_0 : i32, i32
  }
  func.func @transform_1(%arg0: i32) -> (i32, i32) {
    %c0_i32 = arith.constant 0 : i32
    %c0_i32_0 = arith.constant 0 : i32
    %c0_i32_1 = arith.constant 0 : i32
    return %c0_i32, %c0_i32_0 : i32, i32
  }
  func.func @transform_2(%arg0: i32) -> (i32, i32) {
    %c0_i32 = arith.constant 0 : i32
    %c0_i32_0 = arith.constant 0 : i32
    %c0_i32_1 = arith.constant 0 : i32
    return %c0_i32, %c0_i32_0 : i32, i32
  }
  func.func @transform_3(%arg0: i32) -> (i32, i32, i32) {
    %c0_i32 = arith.constant 0 : i32
    %c0_i32_0 = arith.constant 0 : i32
    %c0_i32_1 = arith.constant 0 : i32
    %c0_i32_2 = arith.constant 0 : i32
    return %c0_i32, %c0_i32_0, %c0_i32_1 : i32, i32, i32
  }
  func.func @transform_4(%arg0: i32) -> (i32, i32) {
    %c0_i32 = arith.constant 0 : i32
    %c0_i32_0 = arith.constant 0 : i32
    %c0_i32_1 = arith.constant 0 : i32
    return %c0_i32, %c0_i32_0 : i32, i32
  }
  func.func @transform_5(%arg0: i32) -> (i32, i32) {
    %c0_i32 = arith.constant 0 : i32
    %c0_i32_0 = arith.constant 0 : i32
    %c0_i32_1 = arith.constant 0 : i32
    return %c0_i32, %c0_i32_0 : i32, i32
  }
}

</mosaic_0001>

<bundles_post_ra>
// kernel: _sandpart2_apply.1
= control target key start
LH: loop header
LB: loop body
LE: loop exit
PB: predicated region body
PF: predicated region fallthrough
CT: control target
= control target key end

     0   :  { %vm36_vm0 = vcmask 523264   ;;  %s391_s21 = smov 8   ;;  %s392_s22 = smov 120   ;;  %v202_v48 = vlaneseq  ;;  %s697_s1 = inlined_call_operand.vmem [shape: f32[64,128], index: 1, kind: input, shape index: {}]   ;;  %s698_s0 = inlined_call_operand.vmem [shape: f32[32,64], index: 0, kind: input, shape index: {}]   ;;  %s699_s2 = inlined_call_operand.vmem [shape: f32[32,128], index: 2, kind: input, shape index: {}]   ;;  %s700_s3 = inlined_call_operand.vmem [shape: f32[9,32,128], index: 3, kind: input, shape index: {}]   ;;  %s701_s4 = inlined_call_operand.vmem [shape: f32[32,128], index: 4, kind: input, shape index: {}]   ;;  %s702_s5 = inlined_call_operand.vmem [shape: f32[32,128], index: 5, kind: output, shape index: {}]  }
   0x1   :  { %v31_v0 = vld [vmem:[%s697_s1 + $0x38] sm:$0xff]  ;;  %v30_v1 = vld [vmem:[%s697_s1 + $0x30] sm:$0xff]  ;;  %v29_v2 = vld [vmem:[%s697_s1 + $0x28] sm:$0xff] }
   0x2   :  { %57 = vmatpush.msra.mxu0 %v31_v0  ;;  %366 = vmatpush.msra.mxu2 %v31_v0  ;;  %v28_v3 = vld [vmem:[%s697_s1 + $0x20] sm:$0xff]  ;;  %v27_v4 = vld [vmem:[%s697_s1 + $0x18] sm:$0xff]  ;;  %v26_v5 = vld [vmem:[%s697_s1 + $0x10] sm:$0xff] }
   0x3   :  { %365 = vmatpush.msra.mxu1 %v31_v0  ;;  %367 = vmatpush.msra.mxu3 %v31_v0  ;;  %v25_v6 = vld [vmem:[%s697_s1 + $0x8] sm:$0xff]  ;;  %v24_v7 = vld [vmem:[%s697_s1] sm:$0xff]  ;;  %v22_v9 = vld [vmem:[%s698_s0 + $0x10] sm:$0xff] }
   0x4   :  { %58 = vmatpush.msra.mxu0 %v30_v1  ;;  %369 = vmatpush.msra.mxu2 %v30_v1  ;;  %v20_v8 = vld [vmem:[%s698_s0] sm:$0xff]  ;;  %v21_v10 = vld [vmem:[%s698_s0 + $0x8] sm:$0xff]  ;;  %v23_v11 = vld [vmem:[%s698_s0 + $0x18] sm:$0xff] }
   0x5   :  { %368 = vmatpush.msra.mxu1 %v30_v1  ;;  %370 = vmatpush.msra.mxu3 %v30_v1  ;;  %v32_v12 = vld [vmem:[%s699_s2] sm:$0xff]  ;;  %v33_v15 = vld [vmem:[%s699_s2 + $0x8] sm:$0xff]  ;;  %v34_v18 = vld [vmem:[%s699_s2 + $0x10] sm:$0xff] }
   0x6   :  { %59 = vmatpush.msra.mxu0 %v29_v2  ;;  %372 = vmatpush.msra.mxu2 %v29_v2  ;;  %v35_v22 = vld [vmem:[%s699_s2 + $0x18] sm:$0xff]  ;;  %v98_v29 = vld [vmem:[%s700_s3] sm:$0xff]  ;;  %v335_v37 = vld [vmem:[%s700_s3 + $0x30] sm:$0xff] }
   0x7   :  { %371 = vmatpush.msra.mxu1 %v29_v2  ;;  %373 = vmatpush.msra.mxu3 %v29_v2  ;;  %v353_v31 = vld [vmem:[%s700_s3 + $0xc0] sm:$0xff]  ;;  %v334_v38 = vld [vmem:[%s700_s3 + $0x28] sm:$0xff]  ;;  %v347_v40 = vld [vmem:[%s700_s3 + $0x90] sm:$0xff] }
   0x8   :  { %60 = vmatpush.msra.mxu0 %v28_v3  ;;  %375 = vmatpush.msra.mxu2 %v28_v3  ;;  %v333_v32 = vld [vmem:[%s700_s3 + $0x20] sm:$0xff]  ;;  %v346_v41 = vld [vmem:[%s700_s3 + $0x88] sm:$0xff]  ;;  %v359_v52 = vld [vmem:[%s700_s3 + $0xf0] sm:$0xff] }
   0x9   :  { %374 = vmatpush.msra.mxu1 %v28_v3  ;;  %376 = vmatpush.msra.mxu3 %v28_v3  ;;  %v357_v33 = vld [vmem:[%s700_s3 + $0xe0] sm:$0xff]  ;;  %v358_v42 = vld [vmem:[%s700_s3 + $0xe8] sm:$0xff] }
   0xa   :  { %61 = vmatpush.msra.mxu0 %v27_v4  ;;  %378 = vmatpush.msra.mxu2 %v27_v4  ;;  %v345_v35 = vld [vmem:[%s700_s3 + $0x80] sm:$0xff]  ;;  %v99_v46 = vld [vmem:[%s700_s3 + $0x8] sm:$0xff] }
   0xb   :  { %377 = vmatpush.msra.mxu1 %v27_v4  ;;  %379 = vmatpush.msra.mxu3 %v27_v4  ;;  %v337_v43 = vld [vmem:[%s700_s3 + $0x40] sm:$0xff]  ;;  %v342_v47 = vld [vmem:[%s700_s3 + $0x68] sm:$0xff] }
   0xc   :  { %62 = vmatpush.msra.mxu0 %v26_v5  ;;  %381 = vmatpush.msra.mxu2 %v26_v5  ;;  %v361_v49 = vld [vmem:[%s700_s3 + $0x100] sm:$0xff]  ;;  %v354_v54 = vld [vmem:[%s700_s3 + $0xc8] sm:$0xff] }
   0xd   :  { %380 = vmatpush.msra.mxu1 %v26_v5  ;;  %382 = vmatpush.msra.mxu3 %v26_v5  ;;  %v338_v55 = vld [vmem:[%s700_s3 + $0x48] sm:$0xff]  ;;  %v541_v5 = vshrl.u32 %v202_v48, 7  ;;  %v351_v48 = vld [vmem:[%s700_s3 + $0xb0] sm:$0xff] }
   0xe   :  { %63 = vmatpush.msra.mxu0 %v25_v6  ;;  %384 = vmatpush.msra.mxu2 %v25_v6  ;;  %v362_v56 = vld [vmem:[%s700_s3 + $0x108] sm:$0xff] }
   0xf   :  { %383 = vmatpush.msra.mxu1 %v25_v6  ;;  %385 = vmatpush.msra.mxu3 %v25_v6  ;;  %vm263_vm1 = vcmp.lt.s32.totalorder %v541_v5, 1  ;;  %vm288_vm2 = vcmp.lt.s32.totalorder %v541_v5, 7 }
  0x10   :  { %64 = vmatpush.msra.mxu0 %v24_v7  ;;  %387 = vmatpush.msra.mxu2 %v24_v7 }
  0x11   :  { %329 = vmatmul.msk.f32.vlgmr.msra.gmra.mxu0 %vm36_vm0, %v20_v8  ;;  %331 = vmatmul.msk.f32.vlgmr.msra.gmra.mxu2 %vm36_vm0, %v22_v9  ;;  %v348_v8 = vld [vmem:[%s700_s3 + $0x98] sm:$0xff]  ;;  %v350_v9 = vld [vmem:[%s700_s3 + $0xa8] sm:$0xff] }
  0x12   :  { %386 = vmatpush.msra.mxu1 %v24_v7  ;;  %388 = vmatpush.msra.mxu3 %v24_v7  ;;  %v336_v7 = vld [vmem:[%s700_s3 + $0x38] sm:$0xff] }
  0x13   :  { %330 = vmatmul.msk.f32.vlgmr.msra.gmra.mxu1 %vm36_vm0, %v21_v10  ;;  %332 = vmatmul.msk.f32.vlgmr.msra.gmra.mxu3 %vm36_vm0, %v23_v11 }
  0x8e   :  { %v66_v13 = vpop.f32.mrf.mxu0 }
  0x8f   :  { %v67_v14 = vadd.f32 %v66_v13, %v32_v12  ;;  %v100_v13 = vld [vmem:[%s700_s3 + $0x10] sm:$0xff] }
  0x90   :  { %v69_v16 = vpop.f32.mrf.mxu1 }
  0x91   :  { %v78_v17 = vmax.f32 %v67_v14, 0.0  ;;  %v70_v19 = vadd.f32 %v69_v16, %v33_v15  ;;  %v355_v16 = vld [vmem:[%s700_s3 + $0xd0] sm:$0xff] }
  0x93   :  { %82 = vrot.lane.b32.xlu0 %v78_v17, %s391_s21  ;;  %90 = vrot.lane.b32.xlu2 %v78_v17, %s392_s22  ;;  %v79_v25 = vmax.f32 %v70_v19, 0.0  ;;  %v111_v39 = vmul.f32 %v333_v32, %v78_v17  ;;  %v181_v44 = vmul.f32 %v357_v33, %v78_v17  ;;  %v523_v51 = vmul.f32 %v345_v35, %v78_v17  ;;  %v339_v35 = vld [vmem:[%s700_s3 + $0x50] sm:$0xff] }
  0x94   :  { %v72_v20 = vpop.f32.mrf.mxu2  ;;  %v205_v19 = vadd.s32 16, %v541_v5 }
  0x95   :  { %v73_v21 = vadd.f32 %v72_v20, %v34_v18  ;;  %v112_v53 = vmul.f32 %v334_v38, %v79_v25  ;;  %v147_v60 = vmul.f32 %v346_v41, %v79_v25  ;;  %v182_v61 = vmul.f32 %v358_v42, %v79_v25  ;;  %v363_v41 = vld [vmem:[%s700_s3 + $0x110] sm:$0xff] }
  0x96   :  { %v75_v23 = vpop.f32.mrf.mxu3  ;;  %v225_v42 = vand.u32 15, %v205_v19  ;;  %v349_v19 = vld [vmem:[%s700_s3 + $0xa0] sm:$0xff] }
  0x97   :  { %v80_v24 = vmax.f32 %v73_v21, 0.0  ;;  %v76_v26 = vadd.f32 %v75_v23, %v35_v22  ;;  %v204_v23 = vadd.s32 8, %v541_v5 }
  0x98   :  { %vm614_vm3 = vcmp.eq.s32.totalorder %v225_v42, 0 }
  0x99   :  { %86 = vrot.lane.b32.xlu1 %v80_v24, %s391_s21  ;;  %v471_v27 = vmax.f32 %v76_v26, 0.0  ;;  %v113_v59 = vmul.f32 %v335_v37, %v80_v24  ;;  %v538_v0 = vmul.f32 %v347_v40, %v80_v24  ;;  %v183_v4 = vmul.f32 %v359_v52, %v80_v24  ;;  %v360_v40 = vld [vmem:[%s700_s3 + $0xf8] sm:$0xff] }
  0x9b   :  { %84 = vrot.lane.b32.xlu0 %v79_v25, %s391_s21  ;;  %92 = vrot.lane.b32.xlu2 %v79_v25, %s392_s22  ;;  %v114_v21 = vmul.f32 %v336_v7, %v471_v27  ;;  %v567_v22 = vmul.f32 %v348_v8, %v471_v27  ;;  %v343_v25 = vld [vmem:[%s700_s3 + $0x70] sm:$0xff]  ;;  %v352_v7 = vld [vmem:[%s700_s3 + $0xb8] sm:$0xff]  ;;  %v211_v8 = vand.u32 15, %v541_v5 }
  0x9d   :  { %vm651_vm5 = vcmp.eq.s32.totalorder %v211_v8, 0 }
  0xa1   :  { %88 = vrot.lane.b32.xlu1 %v471_v27, %s391_s21 }
  0xa3   :  { %94 = vrot.lane.b32.xlu0 %v80_v24, %s392_s22 }
  0xa9   :  { %96 = vrot.lane.b32.xlu1 %v471_v27, %s392_s22 }
  0xed   :  { %v475_v28 = vpop.permute.xlu2 %90 }
  0xee   :  { %v124_v63 = vmul.f32 %v337_v43, %v475_v28  ;;  %v194_v3 = vmul.f32 %v361_v49, %v475_v28  ;;  %v218_v49 = vand.u32 15, %v204_v23 }
  0xf0   :  { %vm625_vm4 = vcmp.eq.s32.totalorder %v218_v49, 15 }
  0xf5   :  { %v93_v57 = vpop.permute.xlu2 %92 }
  0xf6   :  { %v125_v10 = vmul.f32 %v338_v55, %v93_v57  ;;  %v195_v11 = vmul.f32 %v362_v56, %v93_v57  ;;  %v160_v24 = vmul.f32 %v350_v9, %v93_v57  ;;  %v344_v57 = vld [vmem:[%s700_s3 + $0x78] sm:$0xff] }
 0x105   :  { %v480_v30 = vpop.permute.xlu0 %82 }
 0x106   :  { %v102_v34 = vmul.f32 %v98_v29, %v480_v30  ;;  %v172_v36 = vmul.f32 %v353_v31, %v480_v30 }
 0x108   :  { %v115_v50 = vadd.f32 %v111_v39, %v102_v34  ;;  %v185_v58 = vadd.f32 %v181_v44, %v172_v36  ;;  %v101_v39 = vld [vmem:[%s700_s3 + $0x18] sm:$0xff] }
 0x10a   :  { %v552_v12 = vadd.f32 %v124_v63, %v115_v50  ;;  %v557_v15 = vadd.f32 %v194_v3, %v185_v58  ;;  %v206_v50 = vadd.s32 24, %v541_v5  ;;  %v184_v58 = vmul.f32 %v360_v40, %v471_v27  ;;  %v364_v3 = vld [vmem:[%s700_s3 + $0x118] sm:$0xff] }
 0x10b   :  { %v87_v45 = vpop.permute.xlu1 %86 }
 0x10c   :  { %v104_v26 = vmul.f32 %v100_v13, %v87_v45  ;;  %v259_v32 = vrot.slane %v552_v12, 7  ;;  %v174_v33 = vmul.f32 %v355_v16, %v87_v45  ;;  %v284_v36 = vrot.slane %v557_v15, 1  ;;  %v316_v12 = vld [vmem:[%s701_s4 + $0x18] sm:$0xff]  ;;  %v313_v15 = vld [vmem:[%s701_s4] sm:$0xff] }
 0x10d   :  { %v85_v62 = vpop.permute.xlu0 %84  ;;  %v139_v44 = vmul.f32 %v343_v25, %v87_v45  ;;  %v341_v45 = vld [vmem:[%s700_s3 + $0x60] sm:$0xff]  ;;  %v232_v13 = vand.u32 15, %v206_v50 }
 0x10e   :  { %v103_v1 = vmul.f32 %v99_v46, %v85_v62  ;;  %v138_v2 = vmul.f32 %v342_v47, %v85_v62  ;;  %v173_v6 = vmul.f32 %v354_v54, %v85_v62  ;;  %v356_v47 = vld [vmem:[%s700_s3 + $0xd8] sm:$0xff]  ;;  %v117_v52 = vadd.f32 %v113_v59, %v104_v26 }
 0x10f   :  { %v187_v56 = vadd.f32 %v183_v4, %v174_v33  ;;  %v137_v4 = vmul.f32 %v341_v45, %v480_v30  ;;  %v152_v9 = vadd.f32 %v538_v0, %v139_v44  ;;  %v314_v33 = vld [vmem:[%s701_s4 + $0x8] sm:$0xff]  ;;  %vm655_vm6 = vcmp.eq.s32.totalorder %v232_v13, 15 }
 0x110   :  { %v116_v14 = vadd.f32 %v112_v53, %v103_v1  ;;  %v151_v17 = vadd.f32 %v147_v60, %v138_v2  ;;  %v186_v18 = vadd.f32 %v182_v61, %v173_v6  ;;  %v340_v2 = vld [vmem:[%s700_s3 + $0x58] sm:$0xff] }
 0x111   :  { %v150_v0 = vadd.f32 %v523_v51, %v137_v4  ;;  %v159_v51 = vmul.f32 %v349_v19, %v475_v28 }
 0x112   :  { %v563_v20 = vadd.f32 %v125_v10, %v116_v14  ;;  %v199_v29 = vadd.f32 %v195_v11, %v186_v18  ;;  %v164_v37 = vadd.f32 %v160_v24, %v151_v17 }
 0x113   :  { %v89_v31 = vpop.permute.xlu1 %88 }
 0x114   :  { %v260_v34 = vrot.slane %v563_v20, 7  ;;  %v285_v38 = vrot.slane %v199_v29, 1  ;;  %v105_v60 = vmul.f32 %v101_v39, %v89_v31  ;;  %v175_v62 = vmul.f32 %v356_v47, %v89_v31  ;;  %v315_v47 = vld [vmem:[%s701_s4 + $0x10] sm:$0xff] }
 0x115   :  { %v95_v43 = vpop.permute.xlu0 %94  ;;  %v140_v10 = vmul.f32 %v344_v57, %v89_v31 }
 0x116   :  { %v266_v46 = vsel %vm263_vm1, %v259_v32, %v260_v34  ;;  %v608_v53 = vsel %vm288_vm2, %v284_v36, %v285_v38  ;;  %v126_v55 = vmul.f32 %v339_v35, %v95_v43  ;;  %v196_v61 = vmul.f32 %v363_v41, %v95_v43 }
 0x117   :  { %v306_v54 = vadd.f32 %v266_v46, %v164_v37  ;;  %v161_v1 = vmul.f32 %v351_v48, %v95_v43  ;;  %v118_v16 = vadd.f32 %v114_v21, %v105_v60  ;;  %v188_v20 = vadd.f32 %v184_v58, %v175_v62 }
 0x118   :  { %v130_v63 = vadd.f32 %v126_v55, %v117_v52  ;;  %v200_v6 = vadd.f32 %v196_v61, %v187_v56  ;;  %v153_v31 = vadd.f32 %v567_v22, %v140_v10  ;;  %v163_v43 = vadd.f32 %v159_v51, %v150_v0 }
 0x119   :  { %v165_v23 = vadd.f32 %v161_v1, %v152_v9 }
 0x11a   :  { %v261_v11 = vrot.slane %v130_v63, 7  ;;  %v286_v17 = vrot.slane %v200_v6, 1 }
 0x11b   :  { %v97_v14 = vpop.permute.xlu1 %96 }
 0x11c   :  { %v127_v30 = vmul.f32 %v340_v2, %v97_v14  ;;  %v197_v18 = vmul.f32 %v364_v3, %v97_v14  ;;  %v265_v24 = vsel %vm263_vm1, %v260_v34, %v261_v11  ;;  %v162_v25 = vmul.f32 %v352_v7, %v97_v14 }
 0x11d   :  { %v278_v26 = vsel %vm614_vm3, 0.0, %v265_v24  ;;  %v290_v21 = vsel %vm288_vm2, %v285_v38, %v286_v17 }
 0x11e   :  { %v131_v29 = vadd.f32 %v127_v30, %v118_v16  ;;  %v302_v35 = vsel %vm625_vm4, 0.0, %v290_v21  ;;  %v307_v34 = vadd.f32 %v278_v26, %v165_v23  ;;  %v201_v37 = vadd.f32 %v197_v18, %v188_v20 }
 0x11f   :  { %v310_v39 = vadd.f32 %v306_v54, %v302_v35  ;;  %v166_v22 = vadd.f32 %v162_v25, %v153_v31 }
 0x120   :  { %v262_v38 = vrot.slane %v131_v29, 7  ;;  %v287_v42 = vrot.slane %v201_v37, 1 }
 0x121   :  { %v318_v44 = vadd.f32 %v314_v33, %v310_v39 }
 0x122   :  { %v264_v46 = vsel %vm263_vm1, %v261_v11, %v262_v38  ;;  %v267_v28 = vsel %vm263_vm1, %v262_v38, %v259_v32  ;;  %v289_v49 = vsel %vm288_vm2, %v286_v17, %v287_v42  ;;  %v292_v50 = vsel %vm288_vm2, %v287_v42, %v284_v36 }
 0x123   :  { %v276_v48 = vsel %vm651_vm5, 0.0, %v267_v28  ;;  %v308_v45 = vadd.f32 %v264_v46, %v166_v22  ;;  %322 = vst [vmem:[%s702_s5 + $0x8] sm:$0xff] %v318_v44  ;;  %v304_v32 = vsel %vm655_vm6, 0.0, %v292_v50  ;;  %v311_v54 = vadd.f32 %v307_v34, %v289_v49 }
 0x124   :  { %v305_v52 = vadd.f32 %v276_v48, %v163_v43 }
 0x125   :  { %v312_v5 = vadd.f32 %v308_v45, %v304_v32  ;;  %v319_v55 = vadd.f32 %v315_v47, %v311_v54 }
 0x126   :  { %v309_v36 = vadd.f32 %v305_v52, %v608_v53 }
 0x127   :  { %v320_v56 = vadd.f32 %v316_v12, %v312_v5  ;;  %323 = vst [vmem:[%s702_s5 + $0x10] sm:$0xff] %v319_v55 }
 0x128   :  { %v317_v57 = vadd.f32 %v313_v15, %v309_v36 }
 0x129   :  { %324 = vst [vmem:[%s702_s5 + $0x18] sm:$0xff] %v320_v56 }
 0x12a   :  { %321 = vst [vmem:[%s702_s5] sm:$0xff] %v317_v57 }

</bundles_post_ra>
